<compile_context>
chip_gen: v7x
topology: tpu7x:2x2x1
jax: 0.10.0
libtpu: 0.0.40
codegen_flags: <defaults>
</compile_context>

<pallas_src>
import jax
import jax.numpy as jnp
from jax import lax
from jax.experimental import pallas as pl
from jax.experimental.pallas import tpu as pltpu

LANE = 128


def _round_up(x, m):
    return (x + m - 1) // m * m


def _cdiv(a, b):
    return -(-a // b)


def simple_cnn_kernel(patches_ref, wconv_ref, wfc_ref, bfc_ref, out_ref):
    # patches_ref: (Bt, Sp, Kd1)  im2col patches + bias lane (zero rows pad Sp)
    # wconv_ref:   (Kd1, Cp)      flattened conv weight with bconv as last row
    # wfc_ref:     (Cp, NCp)      fc weight pre-scaled by 1/(Ho*Wo), zero padded
    # bfc_ref:     (1, NCp)       fc bias, zero padded
    # out_ref:     (Bt, NCp)      lane-dense logits for this batch chunk
    Bt, Sp, Kd1 = patches_ref.shape
    Cp = wconv_ref.shape[1]

    # Conv (+ folded bias) as ONE MXU matmul over all Bt*Sp rows, then ReLU.
    patches = patches_ref[...].reshape(Bt * Sp, Kd1)
    conv = jnp.dot(patches, wconv_ref[...],
                   preferred_element_type=jnp.float32)            # (Bt*Sp, Cp)
    conv = jnp.maximum(conv, 0.0)

    # Global average pool: per-element sum (padded spatial rows are zero);
    # the 1/(Ho*Wo) scale is folded into wfc.
    pooled = jnp.sum(conv.reshape(Bt, Sp, Cp), axis=1)            # (Bt, Cp)

    # Fully connected head for the whole batch chunk at once.
    logits = jnp.dot(pooled, wfc_ref[...],
                     preferred_element_type=jnp.float32) + bfc_ref[...]
    out_ref[...] = logits.astype(out_ref.dtype)


def simple_cnn_forward(x_nchw, wconv_hwio, bconv, wfc, bfc, *, block_batch=None):
    """x_nchw: (B, Cin, H, W) f32 -> logits (B, num_classes) f32."""
    B, Cin, H, W = x_nchw.shape
    KH, KW, _, Cout = wconv_hwio.shape
    num_classes = wfc.shape[1]
    Ho, Wo = H - KH + 1, W - KW + 1
    n_spatial = Ho * Wo                     # 196
    Sp = _round_up(n_spatial, 8)            # 200 (full sublane groups)
    Kdim = KH * KW * Cin                    # 36
    Kd1 = Kdim + 1                          # 37: extra lane carries the conv bias
    Cp = _round_up(Cout, LANE)              # 8   -> 128
    NCp = _round_up(num_classes, LANE)      # 10  -> 128

    # Batch elements per grid step: amortize per-step overhead but keep >= 2
    # grid steps when possible so v7x's two TensorCores both get work.
    if block_batch is None:
        block_batch = max(1, min(32, _cdiv(B, 2)))
    Bt = max(1, min(block_batch, B))
    n_steps = _cdiv(B, Bt)
    Bpad = n_steps * Bt

    # ---- wrapper-side layout plumbing (free in XLA, costly in-kernel) ----
    x_nhwc = jnp.transpose(x_nchw, (0, 2, 3, 1))                  # (B, H, W, Cin)
    cols = []
    for kh in range(KH):
        for kw in range(KW):
            cols.append(x_nhwc[:, kh:kh + Ho, kw:kw + Wo, :])
    patches = jnp.stack(cols, axis=3)                             # (B, Ho, Wo, KH*KW, Cin)
    patches = patches.reshape(B, n_spatial, Kdim)                 # kh,kw,ci order matches wconv
    ones = jnp.ones((B, n_spatial, 1), dtype=patches.dtype)       # bias lane (real rows only)
    patches = jnp.concatenate([patches, ones], axis=-1)           # (B, 196, 37)
    # Zero-pad spatial rows 196->200 and batch B->Bpad; padded rows stay all
    # zero (including the bias lane) so they vanish through ReLU and the pool.
    patches = jnp.pad(patches, ((0, Bpad - B), (0, Sp - n_spatial), (0, 0)))

    wconv_flat = wconv_hwio.reshape(Kdim, Cout)
    wconv_aug = jnp.concatenate([wconv_flat, bconv[None, :]], axis=0)   # (37, Cout)
    wconv_p = jnp.pad(wconv_aug, ((0, 0), (0, Cp - Cout)))              # (37, 128)
    wfc_p = jnp.pad(wfc / float(n_spatial),                             # fold mean scale
                    ((0, Cp - Cout), (0, NCp - num_classes)))           # (128, 128)
    bfc_p = jnp.pad(bfc, (0, NCp - num_classes)).reshape(1, NCp)        # (1, 128)

    out_padded = pl.pallas_call(
        simple_cnn_kernel,
        out_shape=jax.ShapeDtypeStruct((n_steps, Bt, NCp), jnp.float32),
        grid=(n_steps,),
        in_specs=[
            pl.BlockSpec((Bt, Sp, Kd1), lambda b: (b, 0, 0)),   # per-chunk patches
            pl.BlockSpec((Kd1, Cp), lambda b: (0, 0)),          # conv weight (+bias row)
            pl.BlockSpec((Cp, NCp), lambda b: (0, 0)),          # fc weight (pre-scaled)
            pl.BlockSpec((1, NCp), lambda b: (0, 0)),           # fc bias
        ],
        out_specs=pl.BlockSpec((None, Bt, NCp), lambda b: (b, 0, 0)),
        compiler_params=pltpu.CompilerParams(
            dimension_semantics=("parallel",)),   # batch chunks split across TCs
    )(patches, wconv_p, wfc_p, bfc_p)

    # Drop batch padding and lane padding outside the kernel.
    return out_padded.reshape(Bpad, NCp)[:B, :num_classes]


def reference_forward(x_nchw, wconv_hwio, bconv, wfc, bfc):
    """Pure-JAX reference matching the PyTorch module semantics."""
    w_oihw = jnp.transpose(wconv_hwio, (3, 2, 0, 1))
    y = lax.conv_general_dilated(
        x_nchw, w_oihw, window_strides=(1, 1), padding="VALID",
        dimension_numbers=("NCHW", "OIHW", "NCHW"))
    y = y + bconv[None, :, None, None]
    y = jnp.maximum(y, 0.0)
    y = y.mean(axis=(2, 3))
    return y @ wfc + bfc[None, :]


if __name__ == "__main__":
    # Small shapes consistent with the module's forward
    B, Cin, H, W = 2, 4, 16, 16
    Cout, K, num_classes = 8, 3, 10

    key = jax.random.PRNGKey(0)
    kx, kw1, kb1, kw2, kb2 = jax.random.split(key, 5)

    x = jax.random.normal(kx, (B, Cin, H, W), dtype=jnp.float32)

    # Deterministic, PyTorch-like uniform init (synthetic weights, no checkpoint)
    fan_conv = Cin * K * K
    bound_conv = 1.0 / jnp.sqrt(fan_conv)
    wconv = jax.random.uniform(kw1, (K, K, Cin, Cout), jnp.float32,
                               -bound_conv, bound_conv)
    bconv = jax.random.uniform(kb1, (Cout,), jnp.float32, -bound_conv, bound_conv)

    bound_fc = 1.0 / jnp.sqrt(Cout)
    wfc = jax.random.uniform(kw2, (Cout, num_classes), jnp.float32,
                             -bound_fc, bound_fc)
    bfc = jax.random.uniform(kb2, (num_classes,), jnp.float32, -bound_fc, bound_fc)

    forward = jax.jit(simple_cnn_forward)
    out = jax.block_until_ready(forward(x, wconv, bconv, wfc, bfc))
    ref = jax.block_until_ready(reference_forward(x, wconv, bconv, wfc, bfc))

    assert out.shape == (B, num_classes)
    assert jnp.allclose(out, ref, atol=1e-4, rtol=1e-4), "mismatch vs JAX reference"
    print("KERNEL_OK")
</pallas_src>

<mosaic_0001>
module attributes {stable_mosaic.version = 11 : i64} {
  func.func @simple_cnn_kernel(%arg0: i32, %arg1: memref<1x200x37xf32, #tpu.memory_space<vmem>>, %arg2: memref<37x128xf32, #tpu.memory_space<vmem>>, %arg3: memref<128x128xf32, #tpu.memory_space<vmem>>, %arg4: memref<1x128xf32, #tpu.memory_space<vmem>>, %arg5: memref<1x1x128xf32, #tpu.memory_space<vmem>>) attributes {dimension_semantics = [#tpu.dimension_semantics<parallel>], iteration_bounds = array<i64: 2>, scalar_prefetch = 0 : i64, scratch_operands = 0 : i64, tpu.core_type = #tpu.core_type<tc>, window_params = [{transform_indices = @transform_0, window_bounds = array<i64: 1, 200, 37>}, {pipeline_mode = #tpu.pipeline_mode<synchronous>, transform_indices = @transform_1, window_bounds = array<i64: 37, 128>}, {pipeline_mode = #tpu.pipeline_mode<synchronous>, transform_indices = @transform_2, window_bounds = array<i64: 128, 128>}, {pipeline_mode = #tpu.pipeline_mode<synchronous>, transform_indices = @transform_3, window_bounds = array<i64: 1, 128>}, {transform_indices = @transform_4, window_bounds = array<i64: 1, 1, 128>}]} {
    %c0 = arith.constant 0 : index
    %c0_0 = arith.constant 0 : index
    %c0_1 = arith.constant 0 : index
    %0 = vector.load %arg1[%c0, %c0_0, %c0_1] : memref<1x200x37xf32, #tpu.memory_space<vmem>>, vector<1x200x37xf32>
    %1 = vector.shape_cast %0 : vector<1x200x37xf32> to vector<200x37xf32>
    %c0_2 = arith.constant 0 : index
    %c0_3 = arith.constant 0 : index
    %2 = vector.load %arg2[%c0_2, %c0_3] : memref<37x128xf32, #tpu.memory_space<vmem>>, vector<37x128xf32>
    %cst = arith.constant dense<0.000000e+00> : vector<200x128xf32>
    %3 = tpu.matmul %1, %2, %cst {dimension_numbers = #tpu.dot_dimension_numbers<[1], [0], [0], [1], [0, 0, 1, 1], [], []>} : vector<200x37xf32>, vector<37x128xf32>, vector<200x128xf32> -> vector<200x128xf32>
    %cst_4 = arith.constant 0.000000e+00 : f32
    %4 = vector.broadcast %cst_4 : f32 to vector<200x128xf32>
    %5 = arith.maximumf %3, %4 : vector<200x128xf32>
    %6 = vector.shape_cast %5 : vector<200x128xf32> to vector<1x200x128xf32>
    %cst_5 = arith.constant dense<0.000000e+00> : vector<1x128xf32>
    %7 = vector.multi_reduction <add>, %6, %cst_5 [1] : vector<1x200x128xf32> to vector<1x128xf32>
    %c0_6 = arith.constant 0 : index
    %c0_7 = arith.constant 0 : index
    %8 = vector.load %arg3[%c0_6, %c0_7] : memref<128x128xf32, #tpu.memory_space<vmem>>, vector<128x128xf32>
    %cst_8 = arith.constant dense<0.000000e+00> : vector<1x128xf32>
    %9 = tpu.matmul %7, %8, %cst_8 {dimension_numbers = #tpu.dot_dimension_numbers<[1], [0], [0], [1], [0, 0, 1, 1], [], []>} : vector<1x128xf32>, vector<128x128xf32>, vector<1x128xf32> -> vector<1x128xf32>
    %c0_9 = arith.constant 0 : index
    %c0_10 = arith.constant 0 : index
    %10 = vector.load %arg4[%c0_9, %c0_10] : memref<1x128xf32, #tpu.memory_space<vmem>>, vector<1x128xf32>
    %11 = arith.addf %9, %10 : vector<1x128xf32>
    %c0_11 = arith.constant 0 : index
    %c0_12 = arith.constant 0 : index
    %c0_13 = arith.constant 0 : index
    %12 = vector.load %arg5[%c0_11, %c0_12, %c0_13] : memref<1x1x128xf32, #tpu.memory_space<vmem>>, vector<1x1x128xf32>
    %13 = vector.shape_cast %12 : vector<1x1x128xf32> to vector<1x128xf32>
    %14 = vector.shape_cast %11 : vector<1x128xf32> to vector<1x1x128xf32>
    tpu.vector_store %arg5[%c0_11, %c0_12, %c0_13], %14 {strides = array<i32>} : memref<1x1x128xf32, #tpu.memory_space<vmem>>, vector<1x1x128xf32>,
    return
  }
  func.func @transform_0(%arg0: i32) -> (i32, i32, i32) {
    %c0_i32 = arith.constant 0 : i32
    %c0_i32_0 = arith.constant 0 : i32
    %c0_i32_1 = arith.constant 0 : i32
    return %arg0, %c0_i32, %c0_i32_0 : i32, i32, i32
  }
  func.func @transform_1(%arg0: i32) -> (i32, i32) {
    %c0_i32 = arith.constant 0 : i32
    %c0_i32_0 = arith.constant 0 : i32
    %c0_i32_1 = arith.constant 0 : i32
    return %c0_i32, %c0_i32_0 : i32, i32
  }
  func.func @transform_2(%arg0: i32) -> (i32, i32) {
    %c0_i32 = arith.constant 0 : i32
    %c0_i32_0 = arith.constant 0 : i32
    %c0_i32_1 = arith.constant 0 : i32
    return %c0_i32, %c0_i32_0 : i32, i32
  }
  func.func @transform_3(%arg0: i32) -> (i32, i32) {
    %c0_i32 = arith.constant 0 : i32
    %c0_i32_0 = arith.constant 0 : i32
    %c0_i32_1 = arith.constant 0 : i32
    return %c0_i32, %c0_i32_0 : i32, i32
  }
  func.func @transform_4(%arg0: i32) -> (i32, i32, i32) {
    %c0_i32 = arith.constant 0 : i32
    %c0_i32_0 = arith.constant 0 : i32
    %c0_i32_1 = arith.constant 0 : i32
    return %arg0, %c0_i32, %c0_i32_0 : i32, i32, i32
  }
}

</mosaic_0001>

<bundles_post_ra>
// kernel: simple_cnn_forward.1
= control target key start
LH: loop header
LB: loop body
LE: loop exit
PB: predicated region body
PF: predicated region fallthrough
CT: control target
= control target key end

     0   :  { %9 = vsyncpa [#allocation3], 0  ;;  %s1375_s0 = inlined_call_operand.vmem [shape: f32[2,200,37], index: 0, kind: input, shape index: {}]   ;;  %s1376_s1 = inlined_call_operand.vmem [shape: f32[37,128], index: 1, kind: input, shape index: {}]   ;;  %s1377_s2 = inlined_call_operand.vmem [shape: f32[128,128], index: 2, kind: input, shape index: {}]   ;;  %s1378_s3 = inlined_call_operand.vmem [shape: f32[1,128], index: 3, kind: input, shape index: {}]   ;;  %s1379_s4 = inlined_call_operand.hbm [shape: f32[2,1,128], index: 4, kind: output, shape index: {}]  }
   0x1   :  { %11 = vsyncpa [#allocation3 + $0x1], 0  ;;  %s1079_s15 = smov 0   ;;  %s1081_s16 = smov 0  }
   0x2   :  { %s1083_s17 = smov 0   ;;  %s1085_s18 = smov 0  }
   0x3 LB: > { %s1100_s19 = sadd.s32 4294967295, %s1048_s18   ;;  %s706_s20 = sadd.s32 4294967294, %s1048_s18   ;;  %s1048_s18 = sphi %s1085_s18, %s1385_s18   ;;  %s1044_s17 = sphi %s1083_s17, %s1384_s17   ;;  %s1040_s16 = sphi %s1081_s16, %s1383_s16   ;;  %s1036_s15 = sphi %s1079_s15, %s1382_s15  }
   0x4   : > { %s1104_s21 = sadd.s32 1, %s1048_s18   ;;  %s113_s22 = sadd.s32 1, %s1044_s17 }
   0x5   : > { %s110_s23 = ssub.s32 %s1048_s18, %s1104_s21  ;;  %p123_p0 = scmp.ne.s32.totalorder %s1044_s17, %s1040_s16 }
   0x6   : > { %p111_p1 = scmp.eq.s32.totalorder %s110_s23, 0  ;;  %p124_p2 = scmp.eq.s32.totalorder %s1100_s19, 1 }
   0x7   : > { %p129_p3 = scmp.ne.s32.totalorder %s1040_s16, %s1036_s15  ;;  %p130_p4 = scmp.eq.s32.totalorder %s706_s20, 1 }
   0x8   : > { %s1115_s24 = scalar_select %p111_p1, %s1044_s17, %s113_s22  }
   0x9   : > { %p1117_p5 = por %p124_p2, %p123_p0  ;;  %p1121_p6 = por %p130_p4, %p129_p3 }
   0xa   : > { %p709_p7 = scmp.ge.s32.totalorder %s1048_s18, 1  ;;  %p165_p8 = scmp.lt.s32.totalorder %s1048_s18, 3 }
   0xc   : > { %p166_p9 = pnand %p709_p7, %p165_p8 }
   0xd   : > { %v220_v0 = vld [vmem:[%s1376_s1] sm:$0xff] (!%p166_p9)  ;;  %v221_v1 = vld [vmem:[%s1376_s1 + $0x8] sm:$0xff] (!%p166_p9)  ;;  %v222_v2 = vld [vmem:[%s1376_s1 + $0x10] sm:$0xff] (!%p166_p9)  ;;  %v1050_v3 = vmov (!%p166_p9), 0.0|0.0   ;;  %p190_p10 = scmp.lt.s32.totalorder (!%p166_p9), %s1100_s19, 1  ;;  %vm1051_vm0 = vmmov (!%p166_p9), 0  }
   0xe   : > { %169 = sbr.rel (%p166_p9) target bundleno = 555 (0x22b), region = 36  ;;  %907 = vmatprep.subr.bf16.mxu0 (!%p166_p9), %v1050_v3  ;;  %v908_v4 = vpack.c.bf16 (!%p166_p9), %v221_v1, %v220_v0  ;;  %v223_v5 = vld [vmem:[%s1376_s1 + $0x18] sm:$0xff] (!%p166_p9)  ;;  %937 = vmatprep.subr.bf16.mxu1 (!%p166_p9), %v1050_v3  ;;  %v1052_v6 = vmov (!%p166_p9), 0.0   ;;  %v224_v8 = vld [vmem:[%s1376_s1 + $0x20] sm:$0x1f] (!%p166_p9)  ;;  %vm301_vm1 = vcmask (!%p166_p9), 1044480  }
   0xf   : > { %797 = vmatprep.mubr.msk.f32.mxu0 (!%p166_p9), %vm1051_vm0, %v1052_v6  ;;  %836 = vmatprep.mubr.msk.f32.mxu1 (!%p166_p9), %vm1051_vm0, %v1052_v6  ;;  %v911_v7 = vpack.c.bf16 (!%p166_p9), %v223_v5, %v222_v2  ;;  %vm225_vm2 = vcmask (!%p166_p9), 302080   ;;  %v550_v34 = vld [vmem:[%s1377_s2] sm:$0xff] (!%p166_p9)  ;;  %v551_v35 = vld [vmem:[%s1377_s2 + $0x8] sm:$0xff] (!%p166_p9)  ;;  %v552_v37 = vld [vmem:[%s1377_s2 + $0x10] sm:$0xff] (!%p166_p9)  ;;  %s188_s14 = sand.u32 (!%p166_p9), 1, %s1040_s16   ;;  %s737_s23 = sshll.u32 (!%p166_p9), %s1100_s19, 4 }
  0x10   : > { %909 = vmatpush3.bf16.msra.mxu0 (!%p166_p9), %v908_v4  ;;  %940 = vmatpush3.bf16.msra.mxu1 (!%p166_p9), %v908_v4  ;;  %v914_v36 = vpack.c.bf16 (!%p166_p9), %v551_v35, %v550_v34  ;;  %v553_v38 = vld [vmem:[%s1377_s2 + $0x18] sm:$0xff] (!%p166_p9)  ;;  %v554_v40 = vld [vmem:[%s1377_s2 + $0x20] sm:$0xff] (!%p166_p9)  ;;  %v555_v41 = vld [vmem:[%s1377_s2 + $0x28] sm:$0xff] (!%p166_p9)  ;;  %s189_s27 = scalar_lea.vmem (!%p166_p9), [#allocation2], %s188_s14  ;;  %s1333_s5 = scalar_lea.hbm (!%p166_p9), %s1379_s4, %s737_s23 }
  0x11   : > { %910 = vmatprep.subr.bf16.mxu0 (!%p166_p9), %v1050_v3  ;;  %938 = vmatprep.subr.bf16.mxu1 (!%p166_p9), %v1050_v3  ;;  %v917_v39 = vpack.c.bf16 (!%p166_p9), %v553_v38, %v552_v37  ;;  %v920_v42 = vpack.c.bf16 (!%p166_p9), %v555_v41, %v554_v40  ;;  %v556_v43 = vld [vmem:[%s1377_s2 + $0x30] sm:$0xff] (!%p166_p9)  ;;  %v557_v44 = vld [vmem:[%s1377_s2 + $0x38] sm:$0xff] (!%p166_p9)  ;;  %v558_v46 = vld [vmem:[%s1377_s2 + $0x40] sm:$0xff] (!%p166_p9)  ;;  %s651_s28 = sshll.u32 (!%p166_p9), %s189_s27, 4  ;;  %s639_s6 = scalar_lea.sflag (!%p166_p9), [#allocation3], %s188_s14  ;;  %s1335_s28 = int_to_ptr.vmem [resolvable:$true] %s651_s28 }
  0x12   : > { %v923_v45 = vpack.c.bf16 (!%p166_p9), %v557_v44, %v556_v43  ;;  %v559_v47 = vld [vmem:[%s1377_s2 + $0x48] sm:$0xff] (!%p166_p9)  ;;  %v560_v49 = vld [vmem:[%s1377_s2 + $0x50] sm:$0xff] (!%p166_p9)  ;;  %v561_v50 = vld [vmem:[%s1377_s2 + $0x58] sm:$0xff] (!%p166_p9)  ;;  %s986_s7 = scalar_lea.vmem (!%p166_p9), %s1335_s28, 16 }
  0x13   : > { %v926_v48 = vpack.c.bf16 (!%p166_p9), %v559_v47, %v558_v46  ;;  %v929_v51 = vpack.c.bf16 (!%p166_p9), %v561_v50, %v560_v49  ;;  %v562_v52 = vld [vmem:[%s1377_s2 + $0x60] sm:$0xff] (!%p166_p9)  ;;  %v563_v53 = vld [vmem:[%s1377_s2 + $0x68] sm:$0xff] (!%p166_p9)  ;;  %v564_v55 = vld [vmem:[%s1377_s2 + $0x70] sm:$0xff] (!%p166_p9)  ;;  %p987_p11 = scmp.ne.s32.totalorder (!%p166_p9), %s1335_s28, %s986_s7 }
  0x14   : > { %912 = vmatpush3.bf16.msra.mxu0 (!%p166_p9), %v911_v7  ;;  %941 = vmatpush3.bf16.msra.mxu1 (!%p166_p9), %v911_v7  ;;  %v932_v54 = vpack.c.bf16 (!%p166_p9), %v563_v53, %v562_v52  ;;  %v565_v56 = vld [vmem:[%s1377_s2 + $0x78] sm:$0xff] (!%p166_p9) }
  0x15   : > { %s191_s9 = scalar_select %p190_p10, %s1100_s19, 1  ;;  %795 = vmatprep.subr.mxu0 %v1052_v6  ;;  %939 = vmatprep.subr.mxu1 %v1052_v6  ;;  %v935_v57 = vpack.c.bf16 %v565_v56, %v564_v55 }
  0x16   : > { %p988_p12 = pnand %p987_p11, %p1117_p5  ;;  %s1053_s19 = smov [#allocation2]  }
  0x17   : > { %s943_s10 = smul.u32 200, %s191_s9  ;;  %s990_s8 = sshll.u32 %s1053_s19, 4  ;;  %s991_s8 = int_to_ptr.vmem [resolvable:$false] %s990_s8 }
  0x18   : > { %796 = vmatpush3.msk.msra.mxu0 %vm301_vm1, %v224_v8  ;;  %942 = vmatpush3.msk.msra.mxu1 %vm301_vm1, %v224_v8  ;;  %p989_p13 = pneg %p988_p12  ;;  %s992_s9 = scalar_lea.vmem %s991_s8, 32 }
  0x19   : > { %s1152_s13 = scalar_lea.vmem %s1375_s0, %s943_s10  ;;  %913 = vmatprep.subr.bf16.mxu1 %v1050_v3  ;;  %p993_p0 = scmp.lt.s32.totalorder %s1335_s28, %s991_s8 }
  0x1a   : > { %v195_v9 = vld [vmem:[%s1152_s13] sm:$0xff]  ;;  %v208_v10 = vld [vmem:[%s1152_s13 + $0x68] sm:$0xff]  ;;  %v209_v12 = vld [vmem:[%s1152_s13 + $0x70] sm:$0xff]  ;;  %p994_p1 = scmp.lt.s32.totalorder %s992_s9, %s986_s7 }
  0x1b   : > { %798 = vmatmul.mubr.msk.f32.vlgmr.msra.gmra.mrb[0].mxu0 %vm225_vm2, %v195_v9  ;;  %837 = vmatmul.mubr.msk.f32.vlgmr.msra.gmra.mrb[0].mxu1 %vm225_vm2, %v208_v10  ;;  %v196_v11 = vld [vmem:[%s1152_s13 + $0x8] sm:$0xff]  ;;  %v197_v13 = vld [vmem:[%s1152_s13 + $0x10] sm:$0xff]  ;;  %v210_v14 = vld [vmem:[%s1152_s13 + $0x78] sm:$0xff] }
  0x1c   : > { %800 = vmatprep.mubr.msk.f32.mxu0 %vm1051_vm0, %v1052_v6  ;;  %839 = vmatprep.mubr.msk.f32.mxu1 %vm1051_vm0, %v1052_v6  ;;  %v198_v15 = vld [vmem:[%s1152_s13 + $0x18] sm:$0xff]  ;;  %v211_v16 = vld [vmem:[%s1152_s13 + $0x80] sm:$0xff]  ;;  %v212_v18 = vld [vmem:[%s1152_s13 + $0x88] sm:$0xff]  ;;  %p995_p2 = por %p994_p1, %p993_p0 }
  0x1d   : > { %v199_v17 = vld [vmem:[%s1152_s13 + $0x20] sm:$0xff]  ;;  %v200_v19 = vld [vmem:[%s1152_s13 + $0x28] sm:$0xff]  ;;  %v213_v20 = vld [vmem:[%s1152_s13 + $0x90] sm:$0xff]  ;;  %915 = vmatpush3.bf16.msra.mxu1 %v914_v36 }
  0x1e   : > { %v201_v21 = vld [vmem:[%s1152_s13 + $0x30] sm:$0xff]  ;;  %v214_v22 = vld [vmem:[%s1152_s13 + $0x98] sm:$0xff]  ;;  %v215_v24 = vld [vmem:[%s1152_s13 + $0xa0] sm:$0xff]  ;;  %916 = vmatprep.subr.bf16.mxu1 %v1050_v3  ;;  %p996_p3 = pnand %p995_p2, %p989_p13 }
  0x1f   : > { %801 = vmatmul.mubr.msk.f32.gmra.mrb[2].mxu0 %vm225_vm2, %v196_v11  ;;  %840 = vmatmul.mubr.msk.f32.gmra.mrb[2].mxu1 %vm225_vm2, %v209_v12  ;;  %v202_v23 = vld [vmem:[%s1152_s13 + $0x38] sm:$0xff]  ;;  %v203_v25 = vld [vmem:[%s1152_s13 + $0x40] sm:$0xff]  ;;  %v216_v26 = vld [vmem:[%s1152_s13 + $0xa8] sm:$0xff] }
  0x20   : > { %803 = vmatprep.mubr.msk.f32.mxu0 %vm1051_vm0, %v1052_v6  ;;  %842 = vmatprep.mubr.msk.f32.mxu1 %vm1051_vm0, %v1052_v6  ;;  %v204_v27 = vld [vmem:[%s1152_s13 + $0x48] sm:$0xff]  ;;  %v217_v28 = vld [vmem:[%s1152_s13 + $0xb0] sm:$0xff]  ;;  %v218_v30 = vld [vmem:[%s1152_s13 + $0xb8] sm:$0xff] }
  0x21   : > { %v205_v29 = vld [vmem:[%s1152_s13 + $0x50] sm:$0xff]  ;;  %v206_v31 = vld [vmem:[%s1152_s13 + $0x58] sm:$0xff]  ;;  %v219_v32 = vld [vmem:[%s1152_s13 + $0xc0] sm:$0xff]  ;;  %918 = vmatpush3.bf16.msra.mxu1 %v917_v39 }
  0x22   : > { %v207_v33 = vld [vmem:[%s1152_s13 + $0x60] sm:$0xff]  ;;  %919 = vmatprep.subr.bf16.mxu1 %v1050_v3 }
  0x23   : > { %804 = vmatmul.mubr.msk.f32.gmra.mrb[4].mxu0 %vm225_vm2, %v197_v13  ;;  %843 = vmatmul.mubr.msk.f32.gmra.mrb[4].mxu1 %vm225_vm2, %v210_v14 }
  0x24   : > { %806 = vmatprep.mubr.msk.f32.mxu0 %vm1051_vm0, %v1052_v6  ;;  %845 = vmatprep.mubr.msk.f32.mxu1 %vm1051_vm0, %v1052_v6 }
  0x25   : > { %921 = vmatpush3.bf16.msra.mxu1 %v920_v42 }
  0x26   : > { %922 = vmatprep.subr.bf16.mxu1 %v1050_v3 }
  0x27   : > { %807 = vmatmul.mubr.msk.f32.gmra.mrb[6].mxu0 %vm225_vm2, %v198_v15  ;;  %846 = vmatmul.mubr.msk.f32.gmra.mrb[6].mxu1 %vm225_vm2, %v211_v16 }
  0x28   : > { %809 = vmatprep.mubr.msk.f32.mxu0 %vm1051_vm0, %v1052_v6  ;;  %848 = vmatprep.mubr.msk.f32.mxu1 %vm1051_vm0, %v1052_v6 }
  0x29   : > { %924 = vmatpush3.bf16.msra.mxu1 %v923_v45 }
  0x2a   : > { %925 = vmatprep.subr.bf16.mxu1 %v1050_v3 }
  0x2b   : > { %810 = vmatmul.mubr.msk.f32.gmra.mrb[8].mxu0 %vm225_vm2, %v199_v17  ;;  %849 = vmatmul.mubr.msk.f32.gmra.mrb[8].mxu1 %vm225_vm2, %v212_v18 }
  0x2c   : > { %812 = vmatprep.mubr.msk.f32.mxu0 %vm1051_vm0, %v1052_v6  ;;  %851 = vmatprep.mubr.msk.f32.mxu1 %vm1051_vm0, %v1052_v6 }
  0x2d   : > { %927 = vmatpush3.bf16.msra.mxu1 %v926_v48 }
  0x2e   : > { %928 = vmatprep.subr.bf16.mxu1 %v1050_v3 }
  0x2f   : > { %813 = vmatmul.mubr.msk.f32.gmra.mrb[10].mxu0 %vm225_vm2, %v200_v19  ;;  %852 = vmatmul.mubr.msk.f32.gmra.mrb[10].mxu1 %vm225_vm2, %v213_v20 }
  0x30   : > { %815 = vmatprep.mubr.msk.f32.mxu0 %vm1051_vm0, %v1052_v6  ;;  %854 = vmatprep.mubr.msk.f32.mxu1 %vm1051_vm0, %v1052_v6 }
  0x31   : > { %930 = vmatpush3.bf16.msra.mxu1 %v929_v51 }
  0x32   : > { %931 = vmatprep.subr.bf16.mxu1 %v1050_v3 }
  0x33   : > { %816 = vmatmul.mubr.msk.f32.gmra.mrb[12].mxu0 %vm225_vm2, %v201_v21  ;;  %855 = vmatmul.mubr.msk.f32.gmra.mrb[12].mxu1 %vm225_vm2, %v214_v22 }
  0x34   : > { %818 = vmatprep.mubr.msk.f32.mxu0 %vm1051_vm0, %v1052_v6  ;;  %857 = vmatprep.mubr.msk.f32.mxu1 %vm1051_vm0, %v1052_v6 }
  0x35   : > { %933 = vmatpush3.bf16.msra.mxu1 %v932_v54 }
  0x36   : > { %934 = vmatprep.subr.bf16.mxu1 %v1050_v3 }
  0x37   : > { %819 = vmatmul.mubr.msk.f32.gmra.mrb[14].mxu0 %vm225_vm2, %v202_v23  ;;  %858 = vmatmul.mubr.msk.f32.gmra.mrb[14].mxu1 %vm225_vm2, %v215_v24 }
  0x38   : > { %821 = vmatprep.mubr.msk.f32.mxu0 %vm1051_vm0, %v1052_v6  ;;  %860 = vmatprep.mubr.msk.f32.mxu1 %vm1051_vm0, %v1052_v6 }
  0x39   : > { %936 = vmatpush3.bf16.msra.mxu1 %v935_v57 }
  0x3b   : > { %822 = vmatmul.mubr.msk.f32.gmra.mrb[16].mxu0 %vm225_vm2, %v203_v25  ;;  %861 = vmatmul.mubr.msk.f32.gmra.mrb[16].mxu1 %vm225_vm2, %v216_v26 }
  0x3c   : > { %824 = vmatprep.mubr.msk.f32.mxu0 %vm1051_vm0, %v1052_v6  ;;  %863 = vmatprep.mubr.msk.f32.mxu1 %vm1051_vm0, %v1052_v6 }
  0x3f   : > { %825 = vmatmul.mubr.msk.f32.gmra.mrb[18].mxu0 %vm225_vm2, %v204_v27  ;;  %864 = vmatmul.mubr.msk.f32.gmra.mrb[18].mxu1 %vm225_vm2, %v217_v28 }
  0x40   : > { %827 = vmatprep.mubr.msk.f32.mxu0 %vm1051_vm0, %v1052_v6  ;;  %866 = vmatprep.mubr.msk.f32.mxu1 %vm1051_vm0, %v1052_v6 }
  0x43   : > { %828 = vmatmul.mubr.msk.f32.gmra.mrb[20].mxu0 %vm225_vm2, %v205_v29  ;;  %867 = vmatmul.mubr.msk.f32.gmra.mrb[20].mxu1 %vm225_vm2, %v218_v30 }
  0x44   : > { %830 = vmatprep.mubr.msk.f32.mxu0 %vm1051_vm0, %v1052_v6  ;;  %869 = vmatprep.mubr.msk.f32.mxu1 %vm1051_vm0, %v1052_v6 }
  0x47   : > { %831 = vmatmul.mubr.msk.f32.gmra.mrb[22].mxu0 %vm225_vm2, %v206_v31  ;;  %870 = vmatmul.mubr.msk.f32.gmra.mrb[22].mxu1 %vm225_vm2, %v219_v32 }
  0x48   : > { %833 = vmatprep.mubr.msk.f32.mxu0 %vm1051_vm0, %v1052_v6  ;;  %904 = vmatprep.mubr.msk.f32.mxu1 %vm1051_vm0, %v1052_v6 }
  0x4b   : > { %834 = vmatmul.mubr.msk.f32.gmra.mrb[24].mxu0 %vm225_vm2, %v207_v33 }
  0xee   : > { %v371_v58 = vpop.f32.mrb[0].mxu0  ;;  %v1313_v59 = vpop.f32.mrb[0].mxu1 }
  0xef   : > { %v799_v60 = vpop.f32.mrb[1].mxu0  ;;  %v838_v61 = vpop.f32.mrb[1].mxu1  ;;  %v495_v0 = vmax.f32 %v371_v58, 0.0 }
  0xf2   : > { %v376_v62 = vpop.f32.mrb[2].mxu0  ;;  %v1315_v63 = vpop.f32.mrb[2].mxu1 }
  0xf3   : > { %v496_v1 = vmax.f32 %v376_v62, 0.0  ;;  %v802_v2 = vpop.f32.mrb[3].mxu0  ;;  %v841_v3 = vpop.f32.mrb[3].mxu1 }
  0xf5   : > { %v520_v4 = vadd.f32 %v496_v1, %v495_v0 }
  0xf6   : > { %v381_v5 = vpop.f32.mrb[4].mxu0  ;;  %v1317_v6 = vpop.f32.mrb[4].mxu1 }
  0xf7   : > { %v497_v7 = vmax.f32 %v381_v5, 0.0  ;;  %v805_v8 = vpop.f32.mrb[5].mxu0  ;;  %v844_v9 = vpop.f32.mrb[5].mxu1 }
  0xf8   : > { %v509_v9 = vmax.f32 %v1315_v63, 0.0 }
  0xf9   : > { %v521_v10 = vadd.f32 %v520_v4, %v497_v7  ;;  %v508_v7 = vmax.f32 %v1313_v59, 0.0 }
  0xfa   : > { %v386_v11 = vpop.f32.mrb[6].mxu0  ;;  %v1319_v12 = vpop.f32.mrb[6].mxu1 }
  0xfb   : > { %v498_v13 = vmax.f32 %v386_v11, 0.0  ;;  %v808_v14 = vpop.f32.mrb[7].mxu0  ;;  %v847_v15 = vpop.f32.mrb[7].mxu1  ;;  %v510_v11 = vmax.f32 %v1317_v6, 0.0 }
  0xfc   : > { %v511_v14 = vmax.f32 %v1319_v12, 0.0 }
  0xfd   : > { %v522_v16 = vadd.f32 %v521_v10, %v498_v13 }
  0xfe   : > { %v391_v17 = vpop.f32.mrb[8].mxu0  ;;  %v456_v18 = vpop.f32.mrb[8].mxu1 }
  0xff   : > { %v499_v19 = vmax.f32 %v391_v17, 0.0  ;;  %v811_v20 = vpop.f32.mrb[9].mxu0  ;;  %v850_v21 = vpop.f32.mrb[9].mxu1 }
 0x101   : > { %v523_v22 = vadd.f32 %v522_v16, %v499_v19  ;;  %v512_v16 = vmax.f32 %v456_v18, 0.0 }
 0x102   : > { %v396_v23 = vpop.f32.mrb[10].mxu0  ;;  %v461_v24 = vpop.f32.mrb[10].mxu1 }
 0x103   : > { %v500_v25 = vmax.f32 %v396_v23, 0.0  ;;  %v814_v26 = vpop.f32.mrb[11].mxu0  ;;  %v853_v27 = vpop.f32.mrb[11].mxu1  ;;  %v513_v19 = vmax.f32 %v461_v24, 0.0 }
 0x105   : > { %v524_v28 = vadd.f32 %v523_v22, %v500_v25 }
 0x106   : > { %v401_v29 = vpop.f32.mrb[12].mxu0  ;;  %v466_v30 = vpop.f32.mrb[12].mxu1 }
 0x107   : > { %v501_v31 = vmax.f32 %v401_v29, 0.0  ;;  %v817_v32 = vpop.f32.mrb[13].mxu0  ;;  %v856_v33 = vpop.f32.mrb[13].mxu1  ;;  %v514_v21 = vmax.f32 %v466_v30, 0.0 }
 0x109   : > { %v525_v34 = vadd.f32 %v524_v28, %v501_v31 }
 0x10a   : > { %v406_v35 = vpop.f32.mrb[14].mxu0  ;;  %v471_v36 = vpop.f32.mrb[14].mxu1 }
 0x10b   : > { %v502_v37 = vmax.f32 %v406_v35, 0.0  ;;  %v820_v38 = vpop.f32.mrb[15].mxu0  ;;  %v859_v39 = vpop.f32.mrb[15].mxu1  ;;  %v515_v25 = vmax.f32 %v471_v36, 0.0  ;;  %v566_v35 = vld [vmem:[%s1378_s3] sm:$0x1] }
 0x10d   : > { %v526_v40 = vadd.f32 %v525_v34, %v502_v37 }
 0x10e   : > { %v411_v41 = vpop.f32.mrb[16].mxu0  ;;  %v476_v42 = vpop.f32.mrb[16].mxu1 }
 0x10f   : > { %v503_v43 = vmax.f32 %v411_v41, 0.0  ;;  %v823_v44 = vpop.f32.mrb[17].mxu0  ;;  %v862_v45 = vpop.f32.mrb[17].mxu1  ;;  %v516_v59 = vmax.f32 %v476_v42, 0.0 }
 0x111   : > { %v527_v46 = vadd.f32 %v526_v40, %v503_v43 }
 0x112   : > { %v416_v47 = vpop.f32.mrb[18].mxu0  ;;  %v481_v48 = vpop.f32.mrb[18].mxu1 }
 0x113   : > { %v504_v49 = vmax.f32 %v416_v47, 0.0  ;;  %v826_v50 = vpop.f32.mrb[19].mxu0  ;;  %v865_v51 = vpop.f32.mrb[19].mxu1  ;;  %v517_v63 = vmax.f32 %v481_v48, 0.0 }
 0x115   : > { %v528_v52 = vadd.f32 %v527_v46, %v504_v49 }
 0x116   : > { %v421_v53 = vpop.f32.mrb[20].mxu0  ;;  %v486_v54 = vpop.f32.mrb[20].mxu1 }
 0x117   : > { %v505_v55 = vmax.f32 %v421_v53, 0.0  ;;  %v829_v56 = vpop.f32.mrb[21].mxu0  ;;  %v868_v57 = vpop.f32.mrb[21].mxu1  ;;  %v518_v6 = vmax.f32 %v486_v54, 0.0 }
 0x119   : > { %v529_v58 = vadd.f32 %v528_v52, %v505_v55 }
 0x11a   : > { %v426_v60 = vpop.f32.mrb[22].mxu0  ;;  %v491_v61 = vpop.f32.mrb[22].mxu1 }
 0x11b   : > { %v506_v62 = vmax.f32 %v426_v60, 0.0  ;;  %v832_v0 = vpop.f32.mrb[23].mxu0  ;;  %v871_v1 = vpop.f32.mrb[23].mxu1  ;;  %v519_v29 = vmax.f32 %v491_v61, 0.0 }
 0x11d   : > { %v530_v2 = vadd.f32 %v529_v58, %v506_v62 }
 0x11e   : > { %v431_v3 = vpop.f32.mrb[24].mxu0 }
 0x11f   : > { %v507_v4 = vmax.f32 %v431_v3, 0.0  ;;  %v835_v5 = vpop.f32.mrb[25].mxu0 }
 0x121   : > { %v531_v8 = vadd.f32 %v530_v2, %v507_v4 }
 0x123   : > { %v532_v10 = vadd.f32 %v531_v8, %v508_v7 }
 0x125   : > { %v533_v13 = vadd.f32 %v532_v10, %v509_v9 }
 0x127   : > { %v534_v15 = vadd.f32 %v533_v13, %v510_v11 }
 0x129   : > { %v535_v17 = vadd.f32 %v534_v15, %v511_v14 }
 0x12b   : > { %v536_v20 = vadd.f32 %v535_v17, %v512_v16 }
 0x12d   : > { %v537_v22 = vadd.f32 %v536_v20, %v513_v19 }
 0x12f   : > { %v538_v23 = vadd.f32 %v537_v22, %v514_v21 }
 0x131   : > { %v539_v26 = vadd.f32 %v538_v23, %v515_v25 }
 0x133   : > { %v540_v27 = vadd.f32 %v539_v26, %v516_v59 }
 0x135   : > { %v541_v28 = vadd.f32 %v540_v27, %v517_v63 }
 0x137   : > { %v542_v31 = vadd.f32 %v541_v28, %v518_v6 }
 0x139   : > { %v543_v12 = vadd.f32 %v542_v31, %v519_v29 }
 0x13b   : > { %v544_v32 = vrot.slane %v543_v12, 4 }
 0x13d   : > { %v545_v18 = vadd.f32 %v544_v32, %v543_v12 }
 0x13f   : > { %v546_v33 = vrot.slane %v545_v18, 2 }
 0x141   : > { %v547_v24 = vadd.f32 %v546_v33, %v545_v18 }
 0x143   : > { %v548_v34 = vrot.slane %v547_v24, 1 }
 0x145   : > { %v549_v30 = vadd.f32 %v548_v34, %v547_v24 }
 0x147   : > { %905 = vmatmul.mubr.f32.vlgmr.msra.gmra.mrb[24].mxu1 %v549_v30 }
 0x21a   : > { %v633_v36 = vpop.f32.mrb[24].mxu1 }
 0x21b   : > { %v634_v37 = vadd.f32 %v633_v36, %v566_v35  ;;  %v906_v38 = vpop.f32.mrb[25].mxu1 }
 0x21d   : > { %637 = vst [vmem:[%s189_s27] sm:$0x1] %v634_v37 }
 0x21e   : > { %999 = shalt.err (!%p996_p3)
}
 0x21f   : > { %s1000_s10 = scalar_lea.hbm %s1333_s5, 16  ;;  %s1004_s13 = scalar_lea.hbm %s1379_s4, 32 }
 0x220   : > { %p1001_p4 = scmp.ne.s32.totalorder %s1333_s5, %s1000_s10  ;;  %p1005_p9 = scmp.lt.u32.totalorder %s1333_s5, %s1379_s4 }
 0x221   : > { %p1006_p10 = scmp.lt.u32.totalorder %s1004_s13, %s1000_s10  ;;  %p1008_p12 = scmp.lt.u32.totalorder %s1000_s10, %s1333_s5 }
 0x222   : > { %p1002_p7 = pnand %p1001_p4, %p1117_p5 }
 0x223   : > { %p1007_p11 = por %p1006_p10, %p1005_p9 }
 0x224   : > { %p1003_p8 = pneg %p1002_p7 }
 0x225   : > { %p1009_p13 = por %p1008_p12, %p1007_p11 }
 0x227   : > { %p1010_p0 = pnand %p1009_p13, %p1003_p8 }
 0x229   : > { %1013 = shalt.err (!%p1010_p0)
}
 0x22a   : > { %944 = dma.vmem_to_hbm [thread:$0]  (%p1117_p5), %s1335_s28, 16, %s1333_s5, %s639_s6  }
 0x22b PF: > { %p950_p1 = scmp.ge.s32.totalorder %s1048_s18, 2  ;;  %s663_s22 = sand.u32 1, %s1036_s15  }
 0x22c   : > { %s664_s23 = scalar_lea.sflag [#allocation3], %s663_s22 }
 0x22d   : > { %p947_p2 = pnand %p950_p1, %p1121_p6 }
 0x22f   : > { %1031 = dma.done.wait (!%p947_p2), %s664_s23, 16  }
 0x230   : > { %1033 = vsyncadd (!%p947_p2), %s664_s23, 4294967280  ;;  %p14_p3 = scmp.ge.s32.totalorder %s1104_s21, 4   ;;  %s1382_s15 = smov %s1040_s16 }
 0x231   : > { %s1383_s16 = smov %s1044_s17  ;;  %s1384_s17 = smov %s1115_s24 }
 0x232   : > { %s1385_s18 = smov %s1104_s21  ;;  %16 = sbr.rel (!%p14_p3) target bundleno = 3 (0x3), region = 71 }
 0x239   :  { %668 = vsyncpa [#allocation3], 1 }
 0x23a   :  { %670 = vsyncpa [#allocation3 + $0x1], 1 }

</bundles_post_ra>
